<compile_context>
chip_gen: v7x
topology: tpu7x:2x2x1
jax: 0.10.0
libtpu: 0.0.40
codegen_flags: <defaults>
</compile_context>

<pallas_src>
import functools

import numpy as np
import jax
import jax.numpy as jnp
from jax import lax
from jax.experimental import pallas as pl
from jax.experimental.pallas import tpu as pltpu


def _group_sum_bcast(col, n_groups_blk, cpg):
    """col: (C, 1) f32 -> per-channel value = sum over that channel's group."""
    if cpg == 1:
        return col
    parts = []
    for g in range(n_groups_blk):
        s = jnp.sum(col[g * cpg:(g + 1) * cpg, :], axis=0, keepdims=True)  # (1, 1)
        parts.append(jnp.broadcast_to(s, (cpg, 1)))
    return jnp.concatenate(parts, axis=0)                                   # (C, 1)


def conv2d_block_kernel(x_ref, w_ref, m_ref, p_ref, o_ref, *,
                        W, K, HW, cpg, groups_blk, eps,
                        use_bias, one_pass, approx_recip):
    """bt images per step: fused conv matmul -> GroupNorm -> Mish (lane dim = HW)."""
    bt = x_ref.shape[0]
    pad = K // 2
    wmat = w_ref[...]                                   # (Coutc, K*K*Cin_pad)
    bias = p_ref[:, 0:1]                                # (Coutc, 1) f32
    gamma = p_ref[:, 1:2]
    beta = p_ref[:, 2:3]
    inv_cnt = 1.0 / float(cpg * HW)

    for b in range(bt):
        # --- im2col from static lane shifts of the row-padded flat image ---
        # x_ref[b] is (Cin_pad, L); the (kh, kw) patch is a contiguous slice at
        # offset kh*W + kw; columns that wrap into the next row (horizontal
        # 'same' padding) are zeroed with the per-kw mask.  Cin_pad is a
        # multiple of the sublane packing, so the concat is aligned copies.
        pieces = []
        for kh in range(K):
            for kw in range(K):
                s = kh * W + kw
                sl = x_ref[b, :, s:s + HW]              # (Cin_pad, HW)
                if kw != pad:
                    sl = sl * m_ref[kw:kw + 1, :]       # zero invalid columns
                pieces.append(sl)
        cols = jnp.concatenate(pieces, axis=0)          # (K*K*Cin_pad, HW)

        # --- Conv2d: one MXU matmul per image, f32 accumulation ---
        acc = jnp.dot(wmat, cols, preferred_element_type=jnp.float32)  # (Coutc, HW)
        if use_bias:                                    # dead work when cpg == 1
            acc = acc + bias

        # --- GroupNorm (f32 epilogue; one-pass stats on the fast path) ---
        ch_sum = jnp.sum(acc, axis=1, keepdims=True)                    # (Coutc, 1)
        mean = _group_sum_bcast(ch_sum, groups_blk, cpg) * inv_cnt
        cen = acc - mean
        if one_pass:
            ch_ssq = jnp.sum(acc * acc, axis=1, keepdims=True)
            var = _group_sum_bcast(ch_ssq, groups_blk, cpg) * inv_cnt - mean * mean
            var = jnp.maximum(var, 0.0)
        else:
            ch_ssq = jnp.sum(cen * cen, axis=1, keepdims=True)
            var = _group_sum_bcast(ch_ssq, groups_blk, cpg) * inv_cnt
        y = cen * (lax.rsqrt(var + eps) * gamma) + beta

        # --- Mish: y * tanh(softplus(y)) with a single exp (overflow-guarded)
        e = jnp.exp(jnp.minimum(y, 20.0))
        n2 = (e + 1.0) * (e + 1.0)
        if approx_recip:
            t = (n2 - 1.0) * pl.reciprocal(n2 + 1.0, approx=True)
        else:
            t = (n2 - 1.0) / (n2 + 1.0)
        o_ref[b] = (y * t).astype(o_ref.dtype)


def make_conv2d_block(w_oihw, bias, gamma, beta, *, n_groups=8, eps=1e-5,
                      compute_dtype=jnp.bfloat16, out_dtype=None,
                      batch_tile=8, cout_splits=1, exact=None):
    """Precompute weight/param layouts once; return a jitted apply(x) -> NCHW."""
    w_oihw = jnp.asarray(w_oihw, jnp.float32)
    Cout, Cin, K, K2 = w_oihw.shape
    assert K == K2 and K % 2 == 1, "only odd kernel sizes ('same' padding)"
    assert Cout % n_groups == 0, "GroupNorm requires Cout % n_groups == 0"
    assert Cout % cout_splits == 0 and n_groups % cout_splits == 0
    Coutc = Cout // cout_splits
    assert cout_splits == 1 or Coutc % 8 == 0, \
        "Cout chunks must be sublane-aligned (multiple of 8 rows)"
    cpg = Cout // n_groups
    groups_blk = n_groups // cout_splits

    if exact is None:
        exact = jnp.dtype(compute_dtype) == jnp.dtype(jnp.float32)
    if out_dtype is None:
        out_dtype = jnp.float32 if exact else compute_dtype

    # Sublane packing of the compute dtype (8 rows f32, 16 rows bf16): pad Cin
    # so every im2col piece starts on an aligned sublane boundary.
    pack = 8 * (4 // jnp.dtype(compute_dtype).itemsize)
    Cin_pad = ((Cin + pack - 1) // pack) * pack
    p = K // 2

    # Weights -> (Cout, K*K*Cin_pad), row order (kh, kw, ci); padded rows zero.
    w_t = jnp.transpose(w_oihw, (0, 2, 3, 1))                      # (Cout, K, K, Cin)
    w_t = jnp.pad(w_t, ((0, 0), (0, 0), (0, 0), (0, Cin_pad - Cin)))
    w2 = w_t.reshape(Cout, K * K * Cin_pad).astype(compute_dtype)

    # bias/gamma/beta packed into one (Cout, 3) f32 tile -> single tiny DMA.
    params = jnp.stack([jnp.asarray(bias, jnp.float32),
                        jnp.asarray(gamma, jnp.float32),
                        jnp.asarray(beta, jnp.float32)], axis=1)   # (Cout, 3)

    # Per-group mean subtraction exactly cancels a per-channel bias when cpg==1.
    use_bias = cpg > 1

    @jax.jit
    def apply(x):
        N, Cin_x, H, W = x.shape
        assert Cin_x == Cin, "channel mismatch"
        HW = H * W
        assert HW % 128 == 0, "H*W must be a multiple of 128 (lane-dense layout)"
        L = (H + 2 * p) * W + 2 * p
        bt = min(batch_tile, N)
        n_steps = (N + bt - 1) // bt
        N_pad = n_steps * bt

        # Glue: pad batch/channels, row-pad by p, flatten spatial, edge-pad by p.
        # No transposes and no K*K im2col replication in HBM (~1.1x input size).
        xp = jnp.pad(x, ((0, N_pad - N), (0, Cin_pad - Cin), (p, p), (0, 0)))
        x_flat = jnp.pad(xp.reshape(N_pad, Cin_pad, (H + 2 * p) * W),
                         ((0, 0), (0, 0), (p, p))).astype(compute_dtype)  # (N_pad, Cin_pad, L)

        # Per-kw column-validity masks (numpy constant -> folded under jit).
        col = np.arange(HW, dtype=np.int32) % W
        mask = np.stack([((col + kw - p) >= 0) & ((col + kw - p) < W)
                         for kw in range(K)], axis=0)
        mask = jnp.asarray(mask, dtype=compute_dtype)                     # (K, HW)

        kernel = functools.partial(
            conv2d_block_kernel, W=W, K=K, HW=HW, cpg=cpg, groups_blk=groups_blk,
            eps=eps, use_bias=use_bias, one_pass=not exact,
            approx_recip=not exact)

        in_itم = 0  # placeholder removed below
        del in_itم
        in_bytes = (N_pad * Cin_pad * L * jnp.dtype(compute_dtype).itemsize
                    + w2.size * w2.dtype.itemsize
                    + mask.size * jnp.dtype(compute_dtype).itemsize
                    + params.size * 4)
        out_bytes = N_pad * Cout * HW * jnp.dtype(out_dtype).itemsize
        cost = pl.CostEstimate(flops=2 * N_pad * Cout * K * K * Cin_pad * HW,
                               transcendentals=2 * N_pad * Cout * HW,
                               bytes_accessed=in_bytes + out_bytes)

        out = pl.pallas_call(
            kernel,
            out_shape=jax.ShapeDtypeStruct((N_pad, Cout, HW), out_dtype),
            grid=(n_steps, cout_splits),
            in_specs=[
                pl.BlockSpec((bt, Cin_pad, L), lambda n, c: (n, 0, 0)),
                pl.BlockSpec((Coutc, K * K * Cin_pad), lambda n, c: (c, 0)),
                pl.BlockSpec((K, HW), lambda n, c: (0, 0)),
                pl.BlockSpec((Coutc, 3), lambda n, c: (c, 0)),
            ],
            out_specs=pl.BlockSpec((bt, Coutc, HW), lambda n, c: (n, c, 0)),
            compiler_params=pltpu.CompilerParams(
                dimension_semantics=("parallel", "parallel")),
            cost_estimate=cost,
        )(x_flat, w2, mask, params)

        return out[:N].reshape(N, Cout, H, W)            # already NCHW

    return apply


def reference(x, w, b, gamma, beta, *, n_groups, eps=1e-5):
    """Plain-JAX f32 reference of Conv2d -> GroupNorm -> Mish (NCHW)."""
    p = w.shape[-1] // 2
    y = lax.conv_general_dilated(x, w, (1, 1), [(p, p), (p, p)],
                                 dimension_numbers=('NCHW', 'OIHW', 'NCHW'))
    y = y + b[None, :, None, None]
    N, C, H, W = y.shape
    yg = y.reshape(N, n_groups, -1)
    mean = yg.mean(axis=-1, keepdims=True)
    var = yg.var(axis=-1, keepdims=True)
    yn = ((yg - mean) / jnp.sqrt(var + eps)).reshape(N, C, H, W)
    yn = yn * gamma[None, :, None, None] + beta[None, :, None, None]
    return yn * jnp.tanh(jax.nn.softplus(yn))


def _init_params(key, Cin, Cout, K):
    k2, k3, k4, k5 = jax.random.split(key, 4)
    fan_in = Cin * K * K
    bound = 1.0 / (fan_in ** 0.5)
    w = jax.random.uniform(k2, (Cout, Cin, K, K), jnp.float32, -bound, bound)
    b = jax.random.uniform(k3, (Cout,), jnp.float32, -bound, bound)
    gamma = 1.0 + 0.1 * jax.random.normal(k4, (Cout,), jnp.float32)
    beta = 0.1 * jax.random.normal(k5, (Cout,), jnp.float32)
    return w, b, gamma, beta


if __name__ == "__main__":
    key = jax.random.PRNGKey(0)
    kx, kp, kx2, kp2 = jax.random.split(key, 4)

    # ---- Config A: Conv2dBlock(4, 8, 3, n_groups=8) — the module default ----
    N, Cin, Cout, H, W, K, n_groups = 2, 4, 8, 16, 16, 3, 8
    x = jax.random.normal(kx, (N, Cin, H, W), jnp.float32)
    w, b, gamma, beta = _init_params(kp, Cin, Cout, K)
    ref = reference(x, w, b, gamma, beta, n_groups=n_groups)

    # Exact f32 path (two-pass GroupNorm, exact divide): tight check.
    f_exact = make_conv2d_block(w, b, gamma, beta, n_groups=n_groups,
                                compute_dtype=jnp.float32)
    out = jax.block_until_ready(f_exact(x))
    assert out.shape == (N, Cout, H, W), out.shape
    assert float(jnp.max(jnp.abs(out - ref))) < 1e-4

    # Fast path (default): bf16 MXU streams, bf16 output, f32 epilogue,
    # one-pass stats, approx reciprocal in Mish.
    f_fast = make_conv2d_block(w, b, gamma, beta, n_groups=n_groups)
    out_b = jax.block_until_ready(f_fast(x))
    assert out_b.shape == (N, Cout, H, W) and out_b.dtype == jnp.bfloat16
    assert float(jnp.max(jnp.abs(out_b.astype(jnp.float32) - ref))) < 6e-2

    # ---- Config B: n_groups < Cout (cpg > 1), Cout-chunked parallel grid
    #      (v7x two-TC style), and batch padding (N=3 with batch_tile=2). ----
    N2, Cin2, Cout2, n_groups2 = 3, 4, 16, 4
    x2 = jax.random.normal(kx2, (N2, Cin2, H, W), jnp.float32)
    w2_, b2, g2, be2 = _init_params(kp2, Cin2, Cout2, K)
    ref2 = reference(x2, w2_, b2, g2, be2, n_groups=n_groups2)
    f_grp = make_conv2d_block(w2_, b2, g2, be2, n_groups=n_groups2,
                              compute_dtype=jnp.float32,
                              batch_tile=2, cout_splits=2)
    out2 = jax.block_until_ready(f_grp(x2))
    assert out2.shape == (N2, Cout2, H, W), out2.shape
    assert float(jnp.max(jnp.abs(out2 - ref2))) < 1e-4

    print("KERNEL_OK")
</pallas_src>

<mosaic_0001>
module attributes {stable_mosaic.version = 11 : i64} {
  func.func @conv2d_block_kernel(%arg0: i32, %arg1: i32, %arg2: memref<2x8x290xf32, #tpu.memory_space<vmem>>, %arg3: memref<8x72xf32, #tpu.memory_space<vmem>>, %arg4: memref<3x256xf32, #tpu.memory_space<vmem>>, %arg5: memref<8x3xf32, #tpu.memory_space<vmem>>, %arg6: memref<2x8x256xf32, #tpu.memory_space<vmem>>) attributes {dimension_semantics = [#tpu.dimension_semantics<parallel>, #tpu.dimension_semantics<parallel>], iteration_bounds = array<i64: 1, 1>, scalar_prefetch = 0 : i64, scratch_operands = 0 : i64, tpu.core_type = #tpu.core_type<tc>, window_params = [{transform_indices = @transform_0, window_bounds = array<i64: 2, 8, 290>}, {transform_indices = @transform_1, window_bounds = array<i64: 8, 72>}, {pipeline_mode = #tpu.pipeline_mode<synchronous>, transform_indices = @transform_2, window_bounds = array<i64: 3, 256>}, {transform_indices = @transform_3, window_bounds = array<i64: 8, 3>}, {transform_indices = @transform_4, window_bounds = array<i64: 2, 8, 256>}]} {
    %c0 = arith.constant 0 : index
    %c0_0 = arith.constant 0 : index
    %0 = vector.load %arg3[%c0, %c0_0] : memref<8x72xf32, #tpu.memory_space<vmem>>, vector<8x72xf32>
    %c0_1 = arith.constant 0 : index
    %c1 = arith.constant 1 : index
    %1 = vector.load %arg5[%c0_1, %c1] : memref<8x3xf32, #tpu.memory_space<vmem>>, vector<8x1xf32>
    %c0_2 = arith.constant 0 : index
    %c2 = arith.constant 2 : index
    %2 = vector.load %arg5[%c0_2, %c2] : memref<8x3xf32, #tpu.memory_space<vmem>>, vector<8x1xf32>
    %c0_3 = arith.constant 0 : index
    %c0_4 = arith.constant 0 : index
    %c0_5 = arith.constant 0 : index
    %3 = vector.load %arg2[%c0_3, %c0_4, %c0_5] : memref<2x8x290xf32, #tpu.memory_space<vmem>>, vector<1x8x256xf32>
    %4 = vector.shape_cast %3 : vector<1x8x256xf32> to vector<8x256xf32>
    %c0_6 = arith.constant 0 : index
    %c0_7 = arith.constant 0 : index
    %5 = vector.load %arg4[%c0_6, %c0_7] : memref<3x256xf32, #tpu.memory_space<vmem>>, vector<1x256xf32>
    %6 = vector.broadcast %5 : vector<1x256xf32> to vector<8x256xf32>
    %7 = arith.mulf %4, %6 : vector<8x256xf32>
    %c0_8 = arith.constant 0 : index
    %c0_9 = arith.constant 0 : index
    %c1_10 = arith.constant 1 : index
    %8 = vector.load %arg2[%c0_8, %c0_9, %c1_10] : memref<2x8x290xf32, #tpu.memory_space<vmem>>, vector<1x8x256xf32>
    %9 = vector.shape_cast %8 : vector<1x8x256xf32> to vector<8x256xf32>
    %c0_11 = arith.constant 0 : index
    %c0_12 = arith.constant 0 : index
    %c2_13 = arith.constant 2 : index
    %10 = vector.load %arg2[%c0_11, %c0_12, %c2_13] : memref<2x8x290xf32, #tpu.memory_space<vmem>>, vector<1x8x256xf32>
    %11 = vector.shape_cast %10 : vector<1x8x256xf32> to vector<8x256xf32>
    %c2_14 = arith.constant 2 : index
    %c0_15 = arith.constant 0 : index
    %12 = vector.load %arg4[%c2_14, %c0_15] : memref<3x256xf32, #tpu.memory_space<vmem>>, vector<1x256xf32>
    %13 = vector.broadcast %12 : vector<1x256xf32> to vector<8x256xf32>
    %14 = arith.mulf %11, %13 : vector<8x256xf32>
    %c0_16 = arith.constant 0 : index
    %c0_17 = arith.constant 0 : index
    %c16 = arith.constant 16 : index
    %15 = vector.load %arg2[%c0_16, %c0_17, %c16] : memref<2x8x290xf32, #tpu.memory_space<vmem>>, vector<1x8x256xf32>
    %16 = vector.shape_cast %15 : vector<1x8x256xf32> to vector<8x256xf32>
    %c0_18 = arith.constant 0 : index
    %c0_19 = arith.constant 0 : index
    %17 = vector.load %arg4[%c0_18, %c0_19] : memref<3x256xf32, #tpu.memory_space<vmem>>, vector<1x256xf32>
    %18 = vector.broadcast %17 : vector<1x256xf32> to vector<8x256xf32>
    %19 = arith.mulf %16, %18 : vector<8x256xf32>
    %c0_20 = arith.constant 0 : index
    %c0_21 = arith.constant 0 : index
    %c17 = arith.constant 17 : index
    %20 = vector.load %arg2[%c0_20, %c0_21, %c17] : memref<2x8x290xf32, #tpu.memory_space<vmem>>, vector<1x8x256xf32>
    %21 = vector.shape_cast %20 : vector<1x8x256xf32> to vector<8x256xf32>
    %c0_22 = arith.constant 0 : index
    %c0_23 = arith.constant 0 : index
    %c18 = arith.constant 18 : index
    %22 = vector.load %arg2[%c0_22, %c0_23, %c18] : memref<2x8x290xf32, #tpu.memory_space<vmem>>, vector<1x8x256xf32>
    %23 = vector.shape_cast %22 : vector<1x8x256xf32> to vector<8x256xf32>
    %c2_24 = arith.constant 2 : index
    %c0_25 = arith.constant 0 : index
    %24 = vector.load %arg4[%c2_24, %c0_25] : memref<3x256xf32, #tpu.memory_space<vmem>>, vector<1x256xf32>
    %25 = vector.broadcast %24 : vector<1x256xf32> to vector<8x256xf32>
    %26 = arith.mulf %23, %25 : vector<8x256xf32>
    %c0_26 = arith.constant 0 : index
    %c0_27 = arith.constant 0 : index
    %c32 = arith.constant 32 : index
    %27 = vector.load %arg2[%c0_26, %c0_27, %c32] : memref<2x8x290xf32, #tpu.memory_space<vmem>>, vector<1x8x256xf32>
    %28 = vector.shape_cast %27 : vector<1x8x256xf32> to vector<8x256xf32>
    %c0_28 = arith.constant 0 : index
    %c0_29 = arith.constant 0 : index
    %29 = vector.load %arg4[%c0_28, %c0_29] : memref<3x256xf32, #tpu.memory_space<vmem>>, vector<1x256xf32>
    %30 = vector.broadcast %29 : vector<1x256xf32> to vector<8x256xf32>
    %31 = arith.mulf %28, %30 : vector<8x256xf32>
    %c0_30 = arith.constant 0 : index
    %c0_31 = arith.constant 0 : index
    %c33 = arith.constant 33 : index
    %32 = vector.load %arg2[%c0_30, %c0_31, %c33] : memref<2x8x290xf32, #tpu.memory_space<vmem>>, vector<1x8x256xf32>
    %33 = vector.shape_cast %32 : vector<1x8x256xf32> to vector<8x256xf32>
    %c0_32 = arith.constant 0 : index
    %c0_33 = arith.constant 0 : index
    %c34 = arith.constant 34 : index
    %34 = vector.load %arg2[%c0_32, %c0_33, %c34] : memref<2x8x290xf32, #tpu.memory_space<vmem>>, vector<1x8x256xf32>
    %35 = vector.shape_cast %34 : vector<1x8x256xf32> to vector<8x256xf32>
    %c2_34 = arith.constant 2 : index
    %c0_35 = arith.constant 0 : index
    %36 = vector.load %arg4[%c2_34, %c0_35] : memref<3x256xf32, #tpu.memory_space<vmem>>, vector<1x256xf32>
    %37 = vector.broadcast %36 : vector<1x256xf32> to vector<8x256xf32>
    %38 = arith.mulf %35, %37 : vector<8x256xf32>
    %39 = tpu.concatenate %7, %9, %14, %19, %21, %26, %31, %33, %38 in 0 : vector<8x256xf32>, vector<8x256xf32>, vector<8x256xf32>, vector<8x256xf32>, vector<8x256xf32>, vector<8x256xf32>, vector<8x256xf32>, vector<8x256xf32>, vector<8x256xf32> -> vector<72x256xf32>
    %cst = arith.constant dense<0.000000e+00> : vector<8x256xf32>
    %40 = tpu.matmul %0, %39, %cst {dimension_numbers = #tpu.dot_dimension_numbers<[1], [0], [0], [1], [0, 0, 1, 1], [], []>} : vector<8x72xf32>, vector<72x256xf32>, vector<8x256xf32> -> vector<8x256xf32>
    %cst_36 = arith.constant dense<0.000000e+00> : vector<8xf32>
    %41 = vector.multi_reduction <add>, %40, %cst_36 [1] : vector<8x256xf32> to vector<8xf32>
    %42 = vector.shape_cast %41 : vector<8xf32> to vector<8x1xf32>
    %cst_37 = arith.constant 3.906250e-03 : f32
    %43 = vector.broadcast %cst_37 : f32 to vector<8x1xf32>
    %44 = arith.mulf %42, %43 : vector<8x1xf32>
    %45 = vector.broadcast %44 : vector<8x1xf32> to vector<8x256xf32>
    %46 = arith.subf %40, %45 : vector<8x256xf32>
    %47 = arith.mulf %46, %46 : vector<8x256xf32>
    %cst_38 = arith.constant dense<0.000000e+00> : vector<8xf32>
    %48 = vector.multi_reduction <add>, %47, %cst_38 [1] : vector<8x256xf32> to vector<8xf32>
    %49 = vector.shape_cast %48 : vector<8xf32> to vector<8x1xf32>
    %cst_39 = arith.constant 3.906250e-03 : f32
    %50 = vector.broadcast %cst_39 : f32 to vector<8x1xf32>
    %51 = arith.mulf %49, %50 : vector<8x1xf32>
    %cst_40 = arith.constant 9.99999974E-6 : f32
    %52 = vector.broadcast %cst_40 : f32 to vector<8x1xf32>
    %53 = arith.addf %51, %52 : vector<8x1xf32>
    %54 = math.rsqrt %53 : vector<8x1xf32>
    %55 = arith.mulf %54, %1 : vector<8x1xf32>
    %56 = vector.broadcast %55 : vector<8x1xf32> to vector<8x256xf32>
    %57 = arith.mulf %46, %56 : vector<8x256xf32>
    %58 = vector.broadcast %2 : vector<8x1xf32> to vector<8x256xf32>
    %59 = arith.addf %57, %58 : vector<8x256xf32>
    %cst_41 = arith.constant 2.000000e+01 : f32
    %60 = vector.broadcast %cst_41 : f32 to vector<8x256xf32>
    %61 = arith.minimumf %59, %60 : vector<8x256xf32>
    %62 = math.exp %61 : vector<8x256xf32>
    %cst_42 = arith.constant 1.000000e+00 : f32
    %63 = vector.broadcast %cst_42 : f32 to vector<8x256xf32>
    %64 = arith.addf %62, %63 : vector<8x256xf32>
    %cst_43 = arith.constant 1.000000e+00 : f32
    %65 = vector.broadcast %cst_43 : f32 to vector<8x256xf32>
    %66 = arith.addf %62, %65 : vector<8x256xf32>
    %67 = arith.mulf %64, %66 : vector<8x256xf32>
    %cst_44 = arith.constant 1.000000e+00 : f32
    %68 = vector.broadcast %cst_44 : f32 to vector<8x256xf32>
    %69 = arith.subf %67, %68 : vector<8x256xf32>
    %cst_45 = arith.constant 1.000000e+00 : f32
    %70 = vector.broadcast %cst_45 : f32 to vector<8x256xf32>
    %71 = arith.addf %67, %70 : vector<8x256xf32>
    %72 = arith.divf %69, %71 : vector<8x256xf32>
    %73 = arith.mulf %59, %72 : vector<8x256xf32>
    %c0_46 = arith.constant 0 : index
    %c0_47 = arith.constant 0 : index
    %c0_48 = arith.constant 0 : index
    %74 = vector.load %arg6[%c0_46, %c0_47, %c0_48] : memref<2x8x256xf32, #tpu.memory_space<vmem>>, vector<1x8x256xf32>
    %75 = vector.shape_cast %74 : vector<1x8x256xf32> to vector<8x256xf32>
    %76 = vector.shape_cast %73 : vector<8x256xf32> to vector<1x8x256xf32>
    tpu.vector_store %arg6[%c0_46, %c0_47, %c0_48], %76 {strides = array<i32>} : memref<2x8x256xf32, #tpu.memory_space<vmem>>, vector<1x8x256xf32>,
    %c1_49 = arith.constant 1 : index
    %c0_50 = arith.constant 0 : index
    %c0_51 = arith.constant 0 : index
    %77 = vector.load %arg2[%c1_49, %c0_50, %c0_51] : memref<2x8x290xf32, #tpu.memory_space<vmem>>, vector<1x8x256xf32>
    %78 = vector.shape_cast %77 : vector<1x8x256xf32> to vector<8x256xf32>
    %c0_52 = arith.constant 0 : index
    %c0_53 = arith.constant 0 : index
    %79 = vector.load %arg4[%c0_52, %c0_53] : memref<3x256xf32, #tpu.memory_space<vmem>>, vector<1x256xf32>
    %80 = vector.broadcast %79 : vector<1x256xf32> to vector<8x256xf32>
    %81 = arith.mulf %78, %80 : vector<8x256xf32>
    %c1_54 = arith.constant 1 : index
    %c0_55 = arith.constant 0 : index
    %c1_56 = arith.constant 1 : index
    %82 = vector.load %arg2[%c1_54, %c0_55, %c1_56] : memref<2x8x290xf32, #tpu.memory_space<vmem>>, vector<1x8x256xf32>
    %83 = vector.shape_cast %82 : vector<1x8x256xf32> to vector<8x256xf32>
    %c1_57 = arith.constant 1 : index
    %c0_58 = arith.constant 0 : index
    %c2_59 = arith.constant 2 : index
    %84 = vector.load %arg2[%c1_57, %c0_58, %c2_59] : memref<2x8x290xf32, #tpu.memory_space<vmem>>, vector<1x8x256xf32>
    %85 = vector.shape_cast %84 : vector<1x8x256xf32> to vector<8x256xf32>
    %c2_60 = arith.constant 2 : index
    %c0_61 = arith.constant 0 : index
    %86 = vector.load %arg4[%c2_60, %c0_61] : memref<3x256xf32, #tpu.memory_space<vmem>>, vector<1x256xf32>
    %87 = vector.broadcast %86 : vector<1x256xf32> to vector<8x256xf32>
    %88 = arith.mulf %85, %87 : vector<8x256xf32>
    %c1_62 = arith.constant 1 : index
    %c0_63 = arith.constant 0 : index
    %c16_64 = arith.constant 16 : index
    %89 = vector.load %arg2[%c1_62, %c0_63, %c16_64] : memref<2x8x290xf32, #tpu.memory_space<vmem>>, vector<1x8x256xf32>
    %90 = vector.shape_cast %89 : vector<1x8x256xf32> to vector<8x256xf32>
    %c0_65 = arith.constant 0 : index
    %c0_66 = arith.constant 0 : index
    %91 = vector.load %arg4[%c0_65, %c0_66] : memref<3x256xf32, #tpu.memory_space<vmem>>, vector<1x256xf32>
    %92 = vector.broadcast %91 : vector<1x256xf32> to vector<8x256xf32>
    %93 = arith.mulf %90, %92 : vector<8x256xf32>
    %c1_67 = arith.constant 1 : index
    %c0_68 = arith.constant 0 : index
    %c17_69 = arith.constant 17 : index
    %94 = vector.load %arg2[%c1_67, %c0_68, %c17_69] : memref<2x8x290xf32, #tpu.memory_space<vmem>>, vector<1x8x256xf32>
    %95 = vector.shape_cast %94 : vector<1x8x256xf32> to vector<8x256xf32>
    %c1_70 = arith.constant 1 : index
    %c0_71 = arith.constant 0 : index
    %c18_72 = arith.constant 18 : index
    %96 = vector.load %arg2[%c1_70, %c0_71, %c18_72] : memref<2x8x290xf32, #tpu.memory_space<vmem>>, vector<1x8x256xf32>
    %97 = vector.shape_cast %96 : vector<1x8x256xf32> to vector<8x256xf32>
    %c2_73 = arith.constant 2 : index
    %c0_74 = arith.constant 0 : index
    %98 = vector.load %arg4[%c2_73, %c0_74] : memref<3x256xf32, #tpu.memory_space<vmem>>, vector<1x256xf32>
    %99 = vector.broadcast %98 : vector<1x256xf32> to vector<8x256xf32>
    %100 = arith.mulf %97, %99 : vector<8x256xf32>
    %c1_75 = arith.constant 1 : index
    %c0_76 = arith.constant 0 : index
    %c32_77 = arith.constant 32 : index
    %101 = vector.load %arg2[%c1_75, %c0_76, %c32_77] : memref<2x8x290xf32, #tpu.memory_space<vmem>>, vector<1x8x256xf32>
    %102 = vector.shape_cast %101 : vector<1x8x256xf32> to vector<8x256xf32>
    %c0_78 = arith.constant 0 : index
    %c0_79 = arith.constant 0 : index
    %103 = vector.load %arg4[%c0_78, %c0_79] : memref<3x256xf32, #tpu.memory_space<vmem>>, vector<1x256xf32>
    %104 = vector.broadcast %103 : vector<1x256xf32> to vector<8x256xf32>
    %105 = arith.mulf %102, %104 : vector<8x256xf32>
    %c1_80 = arith.constant 1 : index
    %c0_81 = arith.constant 0 : index
    %c33_82 = arith.constant 33 : index
    %106 = vector.load %arg2[%c1_80, %c0_81, %c33_82] : memref<2x8x290xf32, #tpu.memory_space<vmem>>, vector<1x8x256xf32>
    %107 = vector.shape_cast %106 : vector<1x8x256xf32> to vector<8x256xf32>
    %c1_83 = arith.constant 1 : index
    %c0_84 = arith.constant 0 : index
    %c34_85 = arith.constant 34 : index
    %108 = vector.load %arg2[%c1_83, %c0_84, %c34_85] : memref<2x8x290xf32, #tpu.memory_space<vmem>>, vector<1x8x256xf32>
    %109 = vector.shape_cast %108 : vector<1x8x256xf32> to vector<8x256xf32>
    %c2_86 = arith.constant 2 : index
    %c0_87 = arith.constant 0 : index
    %110 = vector.load %arg4[%c2_86, %c0_87] : memref<3x256xf32, #tpu.memory_space<vmem>>, vector<1x256xf32>
    %111 = vector.broadcast %110 : vector<1x256xf32> to vector<8x256xf32>
    %112 = arith.mulf %109, %111 : vector<8x256xf32>
    %113 = tpu.concatenate %81, %83, %88, %93, %95, %100, %105, %107, %112 in 0 : vector<8x256xf32>, vector<8x256xf32>, vector<8x256xf32>, vector<8x256xf32>, vector<8x256xf32>, vector<8x256xf32>, vector<8x256xf32>, vector<8x256xf32>, vector<8x256xf32> -> vector<72x256xf32>
    %cst_88 = arith.constant dense<0.000000e+00> : vector<8x256xf32>
    %114 = tpu.matmul %0, %113, %cst_88 {dimension_numbers = #tpu.dot_dimension_numbers<[1], [0], [0], [1], [0, 0, 1, 1], [], []>} : vector<8x72xf32>, vector<72x256xf32>, vector<8x256xf32> -> vector<8x256xf32>
    %cst_89 = arith.constant dense<0.000000e+00> : vector<8xf32>
    %115 = vector.multi_reduction <add>, %114, %cst_89 [1] : vector<8x256xf32> to vector<8xf32>
    %116 = vector.shape_cast %115 : vector<8xf32> to vector<8x1xf32>
    %cst_90 = arith.constant 3.906250e-03 : f32
    %117 = vector.broadcast %cst_90 : f32 to vector<8x1xf32>
    %118 = arith.mulf %116, %117 : vector<8x1xf32>
    %119 = vector.broadcast %118 : vector<8x1xf32> to vector<8x256xf32>
    %120 = arith.subf %114, %119 : vector<8x256xf32>
    %121 = arith.mulf %120, %120 : vector<8x256xf32>
    %cst_91 = arith.constant dense<0.000000e+00> : vector<8xf32>
    %122 = vector.multi_reduction <add>, %121, %cst_91 [1] : vector<8x256xf32> to vector<8xf32>
    %123 = vector.shape_cast %122 : vector<8xf32> to vector<8x1xf32>
    %cst_92 = arith.constant 3.906250e-03 : f32
    %124 = vector.broadcast %cst_92 : f32 to vector<8x1xf32>
    %125 = arith.mulf %123, %124 : vector<8x1xf32>
    %cst_93 = arith.constant 9.99999974E-6 : f32
    %126 = vector.broadcast %cst_93 : f32 to vector<8x1xf32>
    %127 = arith.addf %125, %126 : vector<8x1xf32>
    %128 = math.rsqrt %127 : vector<8x1xf32>
    %129 = arith.mulf %128, %1 : vector<8x1xf32>
    %130 = vector.broadcast %129 : vector<8x1xf32> to vector<8x256xf32>
    %131 = arith.mulf %120, %130 : vector<8x256xf32>
    %132 = vector.broadcast %2 : vector<8x1xf32> to vector<8x256xf32>
    %133 = arith.addf %131, %132 : vector<8x256xf32>
    %cst_94 = arith.constant 2.000000e+01 : f32
    %134 = vector.broadcast %cst_94 : f32 to vector<8x256xf32>
    %135 = arith.minimumf %133, %134 : vector<8x256xf32>
    %136 = math.exp %135 : vector<8x256xf32>
    %cst_95 = arith.constant 1.000000e+00 : f32
    %137 = vector.broadcast %cst_95 : f32 to vector<8x256xf32>
    %138 = arith.addf %136, %137 : vector<8x256xf32>
    %cst_96 = arith.constant 1.000000e+00 : f32
    %139 = vector.broadcast %cst_96 : f32 to vector<8x256xf32>
    %140 = arith.addf %136, %139 : vector<8x256xf32>
    %141 = arith.mulf %138, %140 : vector<8x256xf32>
    %cst_97 = arith.constant 1.000000e+00 : f32
    %142 = vector.broadcast %cst_97 : f32 to vector<8x256xf32>
    %143 = arith.subf %141, %142 : vector<8x256xf32>
    %cst_98 = arith.constant 1.000000e+00 : f32
    %144 = vector.broadcast %cst_98 : f32 to vector<8x256xf32>
    %145 = arith.addf %141, %144 : vector<8x256xf32>
    %146 = arith.divf %143, %145 : vector<8x256xf32>
    %147 = arith.mulf %133, %146 : vector<8x256xf32>
    %c1_99 = arith.constant 1 : index
    %c0_100 = arith.constant 0 : index
    %c0_101 = arith.constant 0 : index
    %148 = vector.load %arg6[%c1_99, %c0_100, %c0_101] : memref<2x8x256xf32, #tpu.memory_space<vmem>>, vector<1x8x256xf32>
    %149 = vector.shape_cast %148 : vector<1x8x256xf32> to vector<8x256xf32>
    %150 = vector.shape_cast %147 : vector<8x256xf32> to vector<1x8x256xf32>
    tpu.vector_store %arg6[%c1_99, %c0_100, %c0_101], %150 {strides = array<i32>} : memref<2x8x256xf32, #tpu.memory_space<vmem>>, vector<1x8x256xf32>,
    return
  }
  func.func @transform_0(%arg0: i32, %arg1: i32) -> (i32, i32, i32) {
    %c0_i32 = arith.constant 0 : i32
    %c0_i32_0 = arith.constant 0 : i32
    %c0_i32_1 = arith.constant 0 : i32
    return %arg0, %c0_i32, %c0_i32_0 : i32, i32, i32
  }
  func.func @transform_1(%arg0: i32, %arg1: i32) -> (i32, i32) {
    %c0_i32 = arith.constant 0 : i32
    %c0_i32_0 = arith.constant 0 : i32
    return %arg1, %c0_i32 : i32, i32
  }
  func.func @transform_2(%arg0: i32, %arg1: i32) -> (i32, i32) {
    %c0_i32 = arith.constant 0 : i32
    %c0_i32_0 = arith.constant 0 : i32
    %c0_i32_1 = arith.constant 0 : i32
    return %c0_i32, %c0_i32_0 : i32, i32
  }
  func.func @transform_3(%arg0: i32, %arg1: i32) -> (i32, i32) {
    %c0_i32 = arith.constant 0 : i32
    %c0_i32_0 = arith.constant 0 : i32
    return %arg1, %c0_i32 : i32, i32
  }
  func.func @transform_4(%arg0: i32, %arg1: i32) -> (i32, i32, i32) {
    %c0_i32 = arith.constant 0 : i32
    %c0_i32_0 = arith.constant 0 : i32
    return %arg0, %arg1, %c0_i32 : i32, i32, i32
  }
}

</mosaic_0001>

<bundles_post_ra>
// kernel: apply.1
= control target key start
LH: loop header
LB: loop body
LE: loop exit
PB: predicated region body
PF: predicated region fallthrough
CT: control target
= control target key end

     0   :  { %v23_v0 = vlaneseq  ;;  %s831_s19 = smov 2   ;;  %s832_s20 = smov 16   ;;  %vm63_vm0 = vcmask 130048   ;;  %vm51_vm1 = vcmask 15360   ;;  %vm75_vm2 = vcmask 146432   ;;  %s1096_s2 = inlined_call_operand.vmem [shape: f32[3,256], index: 2, kind: input, shape index: {}]   ;;  %s1097_s0 = inlined_call_operand.vmem [shape: f32[2,8,290], index: 0, kind: input, shape index: {}]   ;;  %s1098_s1 = inlined_call_operand.vmem [shape: f32[8,72], index: 1, kind: input, shape index: {}]   ;;  %s1099_s3 = inlined_call_operand.vmem [shape: f32[8,3], index: 3, kind: input, shape index: {}]   ;;  %s1100_s4 = inlined_call_operand.vmem [shape: f32[2,8,256], index: 4, kind: output, shape index: {}]  }
   0x1   :  { %v642_v2 = vld [vmem:[%s1096_s2 + $0x2] ss:$4 sm:$0x3]  ;;  %v21_v3 = vld [vmem:[%s1096_s2] ss:$4 sm:$0x3] }
   0x2   :  { %v24_v1 = vshrl.u32 %v23_v0, 7  ;;  %v649_v10 = vld [vmem:[%s1096_s2 + $0x2] ss:$4 sm:$0x3]  ;;  %s833_s25 = smov 18   ;;  %s834_s26 = smov 32  }
   0x3   :  { %v342_v13 = vld [vmem:[%s1096_s2] ss:$4 sm:$0x3]  ;;  %s835_s2 = smov 34   ;;  %v908_v17 = vld [vmem:[%s1097_s0 + $0x28] sm:$0xff]  ;;  %v918_v19 = vld [vmem:[%s1097_s0 + $0x10] sm:$0xff] }
   0x4   :  { %v25_v4 = vsub.s32 0, %v24_v1  ;;  %v29_v5 = vsub.s32 1, %v24_v1  ;;  %v903_v16 = vld [vmem:[%s1097_s0 + $0x20] sm:$0xff]  ;;  %v913_v18 = vld [vmem:[%s1097_s0 + $0x8] sm:$0xff]  ;;  %v932_v23 = vld [vmem:[%s1097_s0 + $0x18] sm:$0xff]  ;;  %s836_s13 = smov 127  }
   0x5   :  { %v708_v20 = vpack.i.bf16 %v908_v17, %v903_v16  ;;  %v703_v21 = vpack.i.bf16 %v918_v19, %v913_v18  ;;  %v927_v22 = vld [vmem:[%s1097_s0] sm:$0xff]  ;;  %s837_s14 = smov 111   ;;  %s838_s15 = smov 95   ;;  %vm87_vm3 = vcmask 261120   ;;  %vm116_vm4 = vcmask 1039360  }
   0x6   :  { %v42_v6 = vrot.slane %v642_v2, %v25_v4  ;;  %v878_v7 = vrot.slane %v21_v3, %v25_v4  ;;  %v46_v8 = vrot.slane %v642_v2, %v29_v5  ;;  %v881_v9 = vrot.slane %v21_v3, %v29_v5  ;;  %s839_s0 = smov 126   ;;  %s840_s16 = smov 112  }
   0x7   :  { %v362_v11 = vrot.slane %v649_v10, %v25_v4  ;;  %v366_v12 = vrot.slane %v649_v10, %v29_v5  ;;  %v890_v14 = vrot.slane %v342_v13, %v25_v4  ;;  %v892_v15 = vrot.slane %v342_v13, %v29_v5  ;;  %s841_s17 = smov 110   ;;  %s842_s18 = smov 96  }
   0x8   :  { %47 = vrot.lane.b32.xlu0 %v42_v6, %s831_s19  ;;  %59 = vrot.lane.b32.xlu1 %v878_v7, %s832_s20  ;;  %v713_v24 = vpack.i.bf16 %v932_v23, %v927_v22  ;;  %vm99_vm5 = vcmask 277504   ;;  %vm155_vm6 = vcmask 908288   ;;  %vm194_vm7 = vcmask 777216  }
   0x9   :  { %vm130_vm8 = vcmask 1031168   ;;  %vm144_vm9 = vcmask 916480   ;;  %vm169_vm10 = vcmask 900096   ;;  %vm183_vm11 = vcmask 785408  }
   0xa   :  { %vm208_vm12 = vcmask 769024   ;;  %vm213_vm13 = vcmask 588800  }
   0xc   :  { %49 = vrot.lane.b32.xlu0 %v46_v8, %s831_s19  ;;  %61 = vrot.lane.b32.xlu1 %v881_v9, %s832_s20 }
  0x10   :  { %367 = vrot.lane.b32.xlu0 %v362_v11, %s831_s19  ;;  %369 = vrot.lane.b32.xlu1 %v366_v12, %s831_s19  ;;  %s843_s19 = smov 94  }
  0x14   :  { %378 = vrot.lane.b32.xlu0 %v890_v14, %s832_s20  ;;  %380 = vrot.lane.b32.xlu1 %v892_v15, %s832_s20 }
  0x18   :  { %71 = vrot.lane.b32.xlu0 %v42_v6, %s833_s25  ;;  %73 = vrot.lane.b32.xlu1 %v46_v8, %s833_s25 }
  0x1c   :  { %389 = vrot.lane.b32.xlu0 %v362_v11, %s833_s25  ;;  %391 = vrot.lane.b32.xlu1 %v366_v12, %s833_s25 }
  0x20   :  { %83 = vrot.lane.b32.xlu0 %v878_v7, %s834_s26  ;;  %85 = vrot.lane.b32.xlu1 %v881_v9, %s834_s26 }
  0x24   :  { %400 = vrot.lane.b32.xlu0 %v890_v14, %s834_s26  ;;  %402 = vrot.lane.b32.xlu1 %v892_v15, %s834_s26 }
  0x28   :  { %97 = vrot.lane.b32.xlu1 %v46_v8, %s835_s2  ;;  %95 = vrot.lane.b32.xlu0 %v42_v6, %s835_s2 }
  0x2c   :  { %413 = vrot.lane.b32.xlu1 %v366_v12, %s835_s2  ;;  %411 = vrot.lane.b32.xlu0 %v362_v11, %s835_s2 }
  0x30   :  { %709 = vrot.lane.b32.xlu1 %v708_v20, %s836_s13  ;;  %704 = vrot.lane.b32.xlu0 %v703_v21, %s836_s13 }
  0x34   :  { %719 = vrot.lane.b32.xlu1 %v703_v21, %s837_s14  ;;  %714 = vrot.lane.b32.xlu0 %v713_v24, %s836_s13 }
  0x38   :  { %724 = vrot.lane.b32.xlu1 %v708_v20, %s837_s14  ;;  %734 = vrot.lane.b32.xlu0 %v703_v21, %s838_s15 }
  0x3c   :  { %729 = vrot.lane.b32.xlu1 %v713_v24, %s837_s14  ;;  %739 = vrot.lane.b32.xlu0 %v708_v20, %s838_s15 }
  0x40   :  { %744 = vrot.lane.b32.xlu0 %v713_v24, %s838_s15 }
  0x7a   :  { %v48_v25 = vpop.permute.xlu0 %47  ;;  %v60_v26 = vpop.permute.xlu1 %59 }
  0x7b   :  { %v56_v31 = vmul.f32 %v48_v25, %v927_v22  ;;  %v68_v33 = vmul.f32 %v60_v26, %v927_v22 }
  0x7e   :  { %v50_v27 = vpop.permute.xlu0 %49  ;;  %v62_v28 = vpop.permute.xlu1 %61 }
  0x7f   :  { %v64_v41 = vsel %vm63_vm0, %v60_v26, %v62_v28  ;;  %v70_v47 = vmul.f32 %v62_v28, %v918_v19  ;;  %v52_v52 = vsel %vm51_vm1, %v48_v25, %v50_v27  ;;  %v58_v62 = vmul.f32 %v50_v27, %v918_v19 }
  0x80   :  { %v69_v46 = vmul.f32 %v64_v41, %v913_v18  ;;  %v57_v61 = vmul.f32 %v52_v52, %v913_v18  ;;  %v844_v52 = vmov 0.0  }
  0x81   :  { %584 = vmatprep.mubr.f32.mxu1 %v844_v52  ;;  %281 = vmatprep.mubr.f32.mxu0 %v844_v52 }
  0x82   :  { %v368_v29 = vpop.permute.xlu0 %367  ;;  %v370_v30 = vpop.permute.xlu1 %369  ;;  %v773_v53 = vpack.i.bf16 %v70_v47, %v69_v46  ;;  %v768_v8 = vpack.i.bf16 %v58_v62, %v57_v61  ;;  %v354_v46 = vmul.f32 %v932_v23, %v890_v14 }
  0x83   :  { %v375_v32 = vmul.f32 %v932_v23, %v368_v29  ;;  %v371_v63 = vsel %vm51_vm1, %v368_v29, %v370_v30  ;;  %v377_v11 = vmul.f32 %v908_v17, %v370_v30  ;;  %v34_v30 = vmul.f32 %v881_v9, %v913_v18 }
  0x84   :  { %v376_v10 = vmul.f32 %v903_v16, %v371_v63 }
  0x85   :  { %v748_v34 = vpack.i.bf16 %v375_v32, %v56_v31 }
  0x86   :  { %v379_v35 = vpop.permute.xlu0 %378  ;;  %v381_v36 = vpop.permute.xlu1 %380  ;;  %v778_v28 = vpack.i.bf16 %v377_v11, %v376_v10 }
  0x87   :  { %v386_v37 = vmul.f32 %v932_v23, %v379_v35  ;;  %749 = vrot.lane.b32.xlu1 %v748_v34, %s839_s0  ;;  %v382_v49 = vsel %vm63_vm0, %v379_v35, %v381_v36  ;;  %v388_v55 = vmul.f32 %v908_v17, %v381_v36  ;;  %v355_v35 = vmul.f32 %v903_v16, %v892_v15 }
  0x88   :  { %v387_v54 = vmul.f32 %v903_v16, %v382_v49  ;;  %v33_v15 = vmul.f32 %v878_v7, %v927_v22 }
  0x89   :  { %v753_v38 = vpack.i.bf16 %v386_v37, %v68_v33 }
  0x8a   :  { %v72_v39 = vpop.permute.xlu0 %71  ;;  %v74_v40 = vpop.permute.xlu1 %73  ;;  %v783_v0 = vpack.i.bf16 %v388_v55, %v387_v54 }
  0x8b   :  { %754 = vrot.lane.b32.xlu0 %v753_v38, %s840_s16  ;;  %v80_v44 = vmul.f32 %v72_v39, %v927_v22  ;;  %v76_v56 = vsel %vm75_vm2, %v72_v39, %v74_v40  ;;  %v82_v2 = vmul.f32 %v74_v40, %v918_v19 }
  0x8c   :  { %v81_v1 = vmul.f32 %v76_v56, %v913_v18 }
  0x8e   :  { %v390_v42 = vpop.permute.xlu0 %389  ;;  %v392_v43 = vpop.permute.xlu1 %391  ;;  %v788_v12 = vpack.i.bf16 %v82_v2, %v81_v1 }
  0x8f   :  { %v397_v45 = vmul.f32 %v932_v23, %v390_v42  ;;  %v393_v4 = vsel %vm75_vm2, %v390_v42, %v392_v43  ;;  %v399_v20 = vmul.f32 %v908_v17, %v392_v43 }
  0x90   :  { %v398_v13 = vmul.f32 %v903_v16, %v393_v4 }
  0x91   :  { %v758_v48 = vpack.i.bf16 %v397_v45, %v80_v44 }
  0x92   :  { %v84_v50 = vpop.permute.xlu0 %83  ;;  %v86_v51 = vpop.permute.xlu1 %85  ;;  %v793_v29 = vpack.i.bf16 %v399_v20, %v398_v13 }
  0x93   :  { %759 = vrot.lane.b32.xlu0 %v758_v48, %s841_s17  ;;  %v92_v59 = vmul.f32 %v84_v50, %v927_v22  ;;  %v88_v21 = vsel %vm87_vm3, %v84_v50, %v86_v51  ;;  %v94_v27 = vmul.f32 %v86_v51, %v918_v19 }
  0x94   :  { %v93_v26 = vmul.f32 %v88_v21, %v913_v18 }
  0x96   :  { %v401_v57 = vpop.permute.xlu0 %400  ;;  %v403_v58 = vpop.permute.xlu1 %402  ;;  %v798_v40 = vpack.i.bf16 %v94_v27, %v93_v26 }
  0x97   :  { %v408_v60 = vmul.f32 %v932_v23, %v401_v57  ;;  %774 = vrot.lane.b32.xlu0 %v773_v53, %s840_s16  ;;  %v404_v31 = vsel %vm87_vm3, %v401_v57, %v403_v58  ;;  %v410_v41 = vmul.f32 %v908_v17, %v403_v58 }
  0x98   :  { %v409_v9 = vmul.f32 %v903_v16, %v404_v31 }
  0x99   :  { %v763_v3 = vpack.i.bf16 %v408_v60, %v92_v59 }
  0x9a   :  { %v98_v5 = vpop.permute.xlu1 %97  ;;  %v960_v6 = vpop.permute.xlu0 %95  ;;  %v803_v50 = vpack.i.bf16 %v410_v41, %v409_v9 }
  0x9b   :  { %784 = vrot.lane.b32.xlu0 %v783_v0, %s840_s16  ;;  %764 = vrot.lane.b32.xlu1 %v763_v3, %s842_s18  ;;  %v106_v32 = vmul.f32 %v98_v5, %v918_v19  ;;  %v100_v14 = vsel %vm99_vm5, %v960_v6, %v98_v5  ;;  %v104_v58 = vmul.f32 %v960_v6, %v927_v22 }
  0x9c   :  { %v105_v55 = vmul.f32 %v100_v14, %v913_v18 }
  0x9e   :  { %v414_v24 = vpop.permute.xlu1 %413  ;;  %v412_v25 = vpop.permute.xlu0 %411 }
  0x9f   :  { %789 = vrot.lane.b32.xlu0 %v788_v12, %s841_s17  ;;  %769 = vrot.lane.b32.xlu1 %v768_v8, %s839_s0  ;;  %v421_v47 = vmul.f32 %v908_v17, %v414_v24  ;;  %v419_v17 = vmul.f32 %v932_v23, %v412_v25  ;;  %v415_v56 = vsel %vm99_vm5, %v412_v25, %v414_v24 }
  0xa0   :  { %v420_v57 = vmul.f32 %v903_v16, %v415_v56 }
  0xa2   :  { %v710_v33 = vpop.permute.xlu1 %709  ;;  %v705_v34 = vpop.permute.xlu0 %704 }
  0xa3   :  { %794 = vrot.lane.b32.xlu0 %v793_v29, %s841_s17  ;;  %779 = vrot.lane.b32.xlu1 %v778_v28, %s839_s0  ;;  %v712_v36 = vunpack.i.h.bf16 %v710_v33  ;;  %v711_v37 = vunpack.i.l.bf16 %v710_v33  ;;  %v707_v38 = vunpack.i.h.bf16 %v705_v34  ;;  %v706_v39 = vunpack.i.l.bf16 %v705_v34 }
  0xa5   :  { %v118_v19 = vsel %vm116_vm4, %v706_v39, %v707_v38  ;;  %v432_v42 = vsel %vm116_vm4, %v711_v37, %v712_v36 }
  0xa6   :  { %v715_v43 = vpop.permute.xlu0 %714  ;;  %v655_v44 = vpack.c.bf16 %v118_v19, %v34_v30  ;;  %v671_v45 = vpack.c.bf16 %v432_v42, %v355_v35  ;;  %v1006_v23 = vpop.permute.xlu1 %719 }
  0xa7   :  { %799 = vrot.lane.b32.xlu1 %v798_v40, %s842_s18  ;;  %206 = vrot.lane.b32.xlu0 %v106_v32, %s843_s19  ;;  %v717_v48 = vunpack.i.h.bf16 %v715_v43  ;;  %v716_v49 = vunpack.i.l.bf16 %v715_v43  ;;  %v722_v22 = vunpack.i.h.bf16 %v1006_v23  ;;  %v721_v2 = vunpack.i.l.bf16 %v1006_v23 }
  0xa8   :  { %656 = vmatprep.subr.bf16.mxu0 %v655_v44  ;;  %672 = vmatprep.subr.bf16.mxu1 %v671_v45 }
  0xa9   :  { %v117_v51 = vsel %vm116_vm4, %v716_v49, %v706_v39  ;;  %v431_v7 = vsel %vm116_vm4, %v717_v48, %v711_v37  ;;  %v157_v13 = vsel %vm155_vm6, %v721_v2, %v722_v22 }
  0xaa   :  { %v657_v53 = vpack.c.bf16 %v117_v51, %v33_v15  ;;  %v673_v54 = vpack.c.bf16 %v431_v7, %v354_v46  ;;  %v1002_v59 = vpop.permute.xlu0 %734  ;;  %v1010_v18 = vpop.permute.xlu1 %724 }
  0xab   :  { %804 = vrot.lane.b32.xlu1 %v803_v50, %s842_s18  ;;  %514 = vrot.lane.b32.xlu0 %v421_v47, %s843_s19  ;;  %v727_v3 = vunpack.i.h.bf16 %v1010_v18  ;;  %v726_v4 = vunpack.i.l.bf16 %v1010_v18  ;;  %v737_v5 = vunpack.i.h.bf16 %v1002_v59  ;;  %v736_v6 = vunpack.i.l.bf16 %v1002_v59 }
  0xac   :  { %658 = vmatpush1.bf16.msra.mxu0 %v657_v53  ;;  %674 = vmatpush1.bf16.msra.mxu1 %v673_v54 }
  0xad   :  { %v1028_v20 = vsel %vm155_vm6, %v726_v4, %v727_v3  ;;  %v1033_v21 = vsel %vm194_vm7, %v736_v6, %v737_v5 }
  0xae   :  { %v1004_v60 = vpop.permute.xlu0 %739  ;;  %v1012_v63 = vpop.permute.xlu1 %729 }
  0xaf   :  { %204 = vrot.lane.b32.xlu1 %v105_v55, %s843_s19  ;;  %510 = vrot.lane.b32.xlu0 %v419_v17, %s843_s19  ;;  %v732_v24 = vunpack.i.h.bf16 %v1012_v63  ;;  %v731_v25 = vunpack.i.l.bf16 %v1012_v63  ;;  %v742_v3 = vunpack.i.h.bf16 %v1004_v60  ;;  %v741_v5 = vunpack.i.l.bf16 %v1004_v60 }
  0xb1   :  { %v504_v59 = vsel %vm194_vm7, %v741_v5, %v742_v3  ;;  %v846_v3 = vmov 2  }
  0xb2   :  { %v1008_v61 = vpop.permute.xlu0 %744 }
  0xb3   :  { %512 = vrot.lane.b32.xlu1 %v420_v57, %s843_s19  ;;  %v746_v49 = vunpack.i.l.bf16 %v1008_v61 }
  0xb7   :  { %202 = vrot.lane.b32.xlu1 %v104_v58, %s843_s19  ;;  %v156_v58 = vsel %vm155_vm6, %v731_v25, %v721_v2 }
  0xf9   :  { %v750_v16 = vpop.permute.xlu1 %749 }
  0xfa   :  { %v751_v26 = vunpack.i.l.bf16 %v750_v16  ;;  %v752_v34 = vunpack.i.h.bf16 %v750_v16 }
  0xfd   :  { %v755_v62 = vpop.permute.xlu0 %754 }
  0xfe   :  { %v756_v27 = vunpack.i.l.bf16 %v755_v62  ;;  %v757_v41 = vunpack.i.h.bf16 %v755_v62 }
 0x105   :  { %v1014_v0 = vpop.permute.xlu0 %759 }
 0x106   :  { %v761_v19 = vunpack.i.l.bf16 %v1014_v0  ;;  %v762_v17 = vunpack.i.h.bf16 %v1014_v0 }
 0x109   :  { %v775_v1 = vpop.permute.xlu0 %774 }
 0x10a   :  { %v777_v11 = vunpack.i.h.bf16 %v775_v1  ;;  %v776_v12 = vunpack.i.l.bf16 %v775_v1 }
 0x10c   :  { %v146_v37 = vsel %vm144_vm9, %v776_v12, %v777_v11  ;;  %v145_v40 = vsel %vm144_vm9, %v756_v27, %v776_v12  ;;  %v747_v11 = vunpack.i.h.bf16 %v1008_v61  ;;  %v467_v61 = vsel %vm155_vm6, %v732_v24, %v726_v4 }
 0x10d   :  { %v785_v8 = vpop.permute.xlu0 %784  ;;  %v1022_v10 = vpop.permute.xlu1 %764 }
 0x10e   :  { %v787_v35 = vunpack.i.h.bf16 %v785_v8  ;;  %v786_v36 = vunpack.i.l.bf16 %v785_v8  ;;  %v766_v62 = vunpack.i.l.bf16 %v1022_v10  ;;  %v767_v27 = vunpack.i.h.bf16 %v1022_v10 }
 0x10f   :  { %v503_v18 = vsel %vm194_vm7, %v747_v11, %v741_v5 }
 0x110   :  { %v458_v51 = vsel %vm144_vm9, %v786_v36, %v787_v35  ;;  %v457_v53 = vsel %vm144_vm9, %v757_v41, %v786_v36  ;;  %v17_v35 = vld [vmem:[%s1098_s1] sm:$0xff] }
 0x111   :  { %v790_v28 = vpop.permute.xlu0 %789  ;;  %v770_v29 = vpop.permute.xlu1 %769 }
 0x112   :  { %v792_v30 = vunpack.i.h.bf16 %v790_v28  ;;  %v791_v31 = vunpack.i.l.bf16 %v790_v28  ;;  %v772_v32 = vunpack.i.h.bf16 %v770_v29  ;;  %v771_v33 = vunpack.i.l.bf16 %v770_v29 }
 0x114   :  { %v132_v38 = vsel %vm130_vm8, %v771_v33, %v772_v32  ;;  %v131_v39 = vsel %vm130_vm8, %v751_v26, %v771_v33  ;;  %v171_v9 = vsel %vm169_vm10, %v791_v31, %v792_v30  ;;  %v170_v7 = vsel %vm169_vm10, %v761_v19, %v791_v31 }
 0x115   :  { %v795_v42 = vpop.permute.xlu0 %794  ;;  %v780_v43 = vpop.permute.xlu1 %779  ;;  %v659_v44 = vpack.c.bf16 %v146_v37, %v132_v38  ;;  %v661_v15 = vpack.c.bf16 %v145_v40, %v131_v39  ;;  %v663_v50 = vpack.c.bf16 %v171_v9, %v157_v13  ;;  %v665_v22 = vpack.c.bf16 %v170_v7, %v156_v58 }
 0x116   :  { %v797_v45 = vunpack.i.h.bf16 %v795_v42  ;;  %v796_v46 = vunpack.i.l.bf16 %v795_v42  ;;  %v782_v47 = vunpack.i.h.bf16 %v780_v43  ;;  %v781_v48 = vunpack.i.l.bf16 %v780_v43 }
 0x117   :  { %660 = vmatprep.subr.bf16.mxu0 %v659_v44  ;;  %v195_v13 = vsel %vm194_vm7, %v746_v49, %v736_v6 }
 0x118   :  { %662 = vmatpush1.bf16.msra.mxu0 %v661_v15  ;;  %v445_v52 = vsel %vm130_vm8, %v781_v48, %v782_v47  ;;  %v444_v14 = vsel %vm130_vm8, %v752_v34, %v781_v48  ;;  %v481_v54 = vsel %vm169_vm10, %v796_v46, %v797_v45  ;;  %v480_v0 = vsel %vm169_vm10, %v762_v17, %v796_v46 }
 0x119   :  { %v800_v55 = vpop.permute.xlu1 %799  ;;  %664 = vmatprep.subr.bf16.mxu0 %v663_v50  ;;  %v675_v56 = vpack.c.bf16 %v458_v51, %v445_v52  ;;  %v207_v57 = vpop.permute.xlu0 %206  ;;  %v677_v23 = vpack.c.bf16 %v457_v53, %v444_v14  ;;  %v679_v8 = vpack.c.bf16 %v481_v54, %v1028_v20  ;;  %v681_v30 = vpack.c.bf16 %v480_v0, %v467_v61 }
 0x11a   :  { %v802_v16 = vunpack.i.h.bf16 %v800_v55  ;;  %v801_v1 = vunpack.i.l.bf16 %v800_v55  ;;  %v845_v53 = vmov 1  }
 0x11b   :  { %676 = vmatprep.subr.bf16.mxu1 %v675_v56  ;;  %809 = vset.pattern.permute.xlu1 %v845_v53 }
 0x11c   :  { %666 = vmatpush1.bf16.msra.mxu0 %v665_v22  ;;  %678 = vmatpush1.bf16.msra.mxu1 %v677_v23  ;;  %v185_v2 = vsel %vm183_vm11, %v801_v1, %v802_v16  ;;  %v184_v12 = vsel %vm183_vm11, %v766_v62, %v801_v1  ;;  %v18_v23 = vld [vmem:[%s1099_s3] sm:$0xff] }
 0x11d   :  { %v805_v25 = vpop.permute.xlu1 %804  ;;  %680 = vmatprep.subr.bf16.mxu1 %v679_v8  ;;  %v667_v60 = vpack.c.bf16 %v1033_v21, %v185_v2  ;;  %v515_v26 = vpop.permute.xlu0 %514  ;;  %v669_v20 = vpack.c.bf16 %v195_v13, %v184_v12  ;;  %808 = vset.pattern.permute.xlu0 %v845_v53 }
 0x11e   :  { %v807_v28 = vunpack.i.h.bf16 %v805_v25  ;;  %v806_v29 = vunpack.i.l.bf16 %v805_v25 }
 0x11f   :  { %668 = vmatprep.subr.bf16.mxu0 %v667_v60 }
 0x120   :  { %670 = vmatpush1.bf16.msra.mxu0 %v669_v20  ;;  %682 = vmatpush1.bf16.msra.mxu1 %v681_v30  ;;  %v494_v6 = vsel %vm183_vm11, %v806_v29, %v807_v28  ;;  %v493_v21 = vsel %vm183_vm11, %v767_v27, %v806_v29 }
 0x121   :  { %v205_v63 = vpop.permute.xlu1 %204  ;;  %v683_v31 = vpack.c.bf16 %v504_v59, %v494_v6  ;;  %v685_v4 = vpack.c.bf16 %v503_v18, %v493_v21  ;;  %v511_v24 = vpop.permute.xlu0 %510 }
 0x122   :  { %v210_v10 = vsel %vm208_vm12, %v205_v63, %v207_v57 }
 0x123   :  { %233 = vmatprep.subr.mxu0 %v210_v10  ;;  %684 = vmatprep.subr.bf16.mxu1 %v683_v31 }
 0x124   :  { %686 = vmatpush1.bf16.msra.mxu1 %v685_v4 }
 0x125   :  { %v513_v32 = vpop.permute.xlu1 %512 }
 0x126   :  { %v517_v33 = vsel %vm208_vm12, %v513_v32, %v515_v26  ;;  %v516_v34 = vsel %vm208_vm12, %v511_v24, %v513_v32 }
 0x127   :  { %536 = vmatprep.subr.mxu1 %v517_v33 }
 0x128   :  { %537 = vmatpush1.msra.mxu1 %v516_v34 }
 0x129   :  { %v203_v36 = vpop.permute.xlu1 %202  ;;  %650 = vmatmul.mubr.msk.f32.vlgmr.msra.gmra.mrb[0].mxu1 %vm213_vm13, %v17_v35 }
 0x12a   :  { %v209_v37 = vsel %vm208_vm12, %v203_v36, %v205_v63 }
 0x12b   :  { %234 = vmatpush1.msra.mxu0 %v209_v37 }
 0x12c   :  { %643 = vmatmul.mubr.msk.f32.vlgmr.msra.gmra.mrb[0].mxu0 %vm213_vm13, %v17_v35 }
 0x1fc   :  { %v586_v38 = vpop.f32.mrb[0].mxu1 }
 0x1fd   :  { %v588_v39 = vpop.f32.mrb[1].mxu1 }
 0x1fe   :  { %v591_v40 = vadd.f32 %v588_v39, %v586_v38 }
 0x1ff   :  { %v283_v9 = vpop.f32.mrb[0].mxu0 }
 0x200   :  { %592 = vadd.xlane.f32.xlu0 %v591_v40  ;;  %v285_v41 = vpop.f32.mrb[1].mxu0 }
 0x201   :  { %v288_v19 = vadd.f32 %v285_v41, %v283_v9 }
 0x203   :  { %289 = vadd.xlane.f32.xlu1 %v288_v19 }
 0x28d   :  { %v593_v42 = vpop.xlane.xlu0 %592 }
 0x28e   :  { %v594_v43 = vmul.f32 0.00390625, %v593_v42 }
 0x290   :  { %v595_v44 = vsub.f32 %v586_v38, %v594_v43  ;;  %v596_v15 = vsub.f32 %v588_v39, %v594_v43  ;;  %v290_v45 = vpop.xlane.xlu1 %289 }
 0x291   :  { %v291_v46 = vmul.f32 0.00390625, %v290_v45 }
 0x292   :  { %v597_v47 = vmul.f32 %v595_v44, %v595_v44  ;;  %v598_v48 = vmul.f32 %v596_v15, %v596_v15 }
 0x293   :  { %v292_v49 = vsub.f32 %v283_v9, %v291_v46  ;;  %v293_v50 = vsub.f32 %v285_v41, %v291_v46 }
 0x294   :  { %v599_v51 = vadd.f32 %v598_v48, %v597_v47 }
 0x295   :  { %v294_v7 = vmul.f32 %v292_v49, %v292_v49  ;;  %v295_v52 = vmul.f32 %v293_v50, %v293_v50 }
 0x296   :  { %600 = vadd.xlane.f32.xlu1 %v599_v51 }
 0x297   :  { %v296_v14 = vadd.f32 %v295_v52, %v294_v7 }
 0x299   :  { %297 = vadd.xlane.f32.xlu0 %v296_v14 }
 0x323   :  { %v601_v54 = vpop.xlane.xlu1 %600 }
 0x324   :  { %v602_v17 = vmul.f32 0.00390625, %v601_v54 }
 0x326   :  { %v603_v55 = vadd.f32 1e-05, %v602_v17  ;;  %v298_v56 = vpop.xlane.xlu0 %297 }
 0x327   :  { %v299_v57 = vmul.f32 0.00390625, %v298_v56 }
 0x328   :  { %811 = vrsqrt.f32 %v603_v55 }
 0x329   :  { %v300_v58 = vadd.f32 1e-05, %v299_v57 }
 0x32b   :  { %813 = vrsqrt.f32 %v300_v58 }
 0x332   :  { %v812_v62 = vpop.eup %811 }
 0x333   :  { %v605_v16 = vmul.f32 %v812_v62, %v18_v23 }
 0x335   :  { %v814_v1 = vpop.eup %813  ;;  %608 = vperm.xlu1 %809, %v605_v16  }
 0x336   :  { %v302_v22 = vmul.f32 %v814_v1, %v18_v23 }
 0x338   :  { %305 = vperm.xlu0 %808, %v302_v22  }
 0x339   :  { %810 = vset.pattern.permute.xlu1 %v846_v3 }
 0x33a   :  { %312 = vperm.xlu1 %810, %v18_v23  }
 0x3b4   :  { %v609_v5 = vpop.permute.xlu1 %608 }
 0x3b5   :  { %v611_v0 = vmul.f32 %v609_v5, %v595_v44  ;;  %v612_v11 = vmul.f32 %v609_v5, %v596_v15 }
 0x3b7   :  { %v306_v8 = vpop.permute.xlu0 %305 }
 0x3b8   :  { %v308_v2 = vmul.f32 %v306_v8, %v292_v49  ;;  %v309_v12 = vmul.f32 %v306_v8, %v293_v50 }
 0x3b9   :  { %v313_v13 = vpop.permute.xlu1 %312 }
 0x3ba   :  { %v315_v25 = vadd.f32 %v313_v13, %v308_v2  ;;  %v316_v60 = vadd.f32 %v313_v13, %v309_v12  ;;  %v613_v26 = vadd.f32 %v611_v0, %v313_v13  ;;  %v614_v20 = vadd.f32 %v612_v11, %v313_v13 }
 0x3bc   :  { %v317_v61 = vmin.f32 %v315_v25, 20.0  ;;  %v318_v27 = vmin.f32 %v316_v60, 20.0  ;;  %v615_v28 = vmin.f32 %v613_v26, 20.0  ;;  %v616_v29 = vmin.f32 %v614_v20, 20.0 }
 0x3be   :  { %v319_v30 = vmul.f32 1.442695, %v317_v61  ;;  %v321_v59 = vmul.f32 1.442695, %v318_v27  ;;  %v617_v6 = vmul.f32 1.442695, %v615_v28 }
 0x3bf   :  { %v619_v21 = vmul.f32 1.442695, %v616_v29 }
 0x3c0   :  { %815 = vpow2.f32 %v319_v30 }
 0x3c1   :  { %817 = vpow2.f32 %v321_v59 }
 0x3c2   :  { %819 = vpow2.f32 %v617_v6 }
 0x3c3   :  { %821 = vpow2.f32 %v619_v21 }
 0x3ca   :  { %v816_v18 = vpop.eup %815 }
 0x3cb   :  { %v818_v63 = vpop.eup %817  ;;  %v323_v31 = vadd.f32 1.0, %v816_v18 }
 0x3cc   :  { %v820_v4 = vpop.eup %819  ;;  %v324_v10 = vadd.f32 1.0, %v818_v63 }
 0x3cd   :  { %v822_v24 = vpop.eup %821  ;;  %v325_v32 = vmul.f32 %v323_v31, %v323_v31  ;;  %v621_v33 = vadd.f32 1.0, %v820_v4 }
 0x3ce   :  { %v326_v34 = vmul.f32 %v324_v10, %v324_v10  ;;  %v622_v35 = vadd.f32 1.0, %v822_v24 }
 0x3cf   :  { %v329_v36 = vadd.f32 1.0, %v325_v32  ;;  %v623_v37 = vmul.f32 %v621_v33, %v621_v33  ;;  %v644_v41 = vadd.f32 -1.0, %v325_v32 }
 0x3d0   :  { %v330_v38 = vadd.f32 1.0, %v326_v34  ;;  %v624_v39 = vmul.f32 %v622_v35, %v622_v35  ;;  %v645_v42 = vadd.f32 -1.0, %v326_v34 }
 0x3d1   :  { %823 = vrcp.f32 %v329_v36  ;;  %v627_v40 = vadd.f32 1.0, %v623_v37  ;;  %v651_v15 = vadd.f32 -1.0, %v623_v37 }
 0x3d2   :  { %825 = vrcp.f32 %v330_v38  ;;  %v628_v9 = vadd.f32 1.0, %v624_v39  ;;  %v652_v47 = vadd.f32 -1.0, %v624_v39 }
 0x3d3   :  { %827 = vrcp.f32 %v627_v40 }
 0x3d4   :  { %829 = vrcp.f32 %v628_v9 }
 0x3db   :  { %v824_v19 = vpop.eup %823 }
 0x3dc   :  { %v826_v43 = vpop.eup %825  ;;  %v332_v44 = vmul.f32 %v824_v19, %v644_v41 }
 0x3dd   :  { %v828_v45 = vpop.eup %827  ;;  %v334_v46 = vmul.f32 %v826_v43, %v645_v42 }
 0x3de   :  { %v830_v48 = vpop.eup %829  ;;  %v335_v49 = vmul.f32 %v332_v44, %v315_v25  ;;  %v630_v50 = vmul.f32 %v828_v45, %v651_v15 }
 0x3df   :  { %v336_v51 = vmul.f32 %v334_v46, %v316_v60  ;;  %v632_v7 = vmul.f32 %v830_v48, %v652_v47 }
 0x3e0   :  { %337 = vst [vmem:[%s1100_s4] sm:$0xff] %v335_v49  ;;  %v633_v52 = vmul.f32 %v630_v50, %v613_v26 }
 0x3e1   :  { %338 = vst [vmem:[%s1100_s4 + $0x8] sm:$0xff] %v336_v51  ;;  %v634_v14 = vmul.f32 %v632_v7, %v614_v20 }
 0x3e2   :  { %653 = vst [vmem:[%s1100_s4 + $0x10] sm:$0xff] %v633_v52 }
 0x3e3   :  { %654 = vst [vmem:[%s1100_s4 + $0x18] sm:$0xff] %v634_v14 }

</bundles_post_ra>
